<compile_context>
chip_gen: v6e
topology: v6e:2x2x1
jax: 0.10.0
libtpu: 0.0.40
codegen_flags: <defaults>
</compile_context>

<pallas_src>
from typing import NamedTuple

import jax
import jax.numpy as jnp
from jax.experimental import pallas as pl
from jax.experimental.pallas import tpu as pltpu


def _round_up(n, m):
    return ((n + m - 1) // m) * m


def _cdiv(a, b):
    return (a + b - 1) // b


def _vmem_capacity_bytes():
    try:
        return int(pltpu.get_tpu_info().vmem_capacity_bytes)
    except Exception:
        return 64 * 1024 * 1024  # conservative (v7x-sized) fallback


class FFNParams(NamedTuple):
    """Pre-padded / pre-cast FFN parameters (built once, reused every call)."""
    w1: jax.Array   # (k_steps, in_p, tk)   compute dtype
    b1: jax.Array   # (k_steps, 1,  tk)     float32
    w2: jax.Array   # (k_steps, tk, out_p)  compute dtype
    b2: jax.Array   # (1, out_p)            float32
    in_ch: int
    hid_ch: int
    out_ch: int
    in_p: int
    out_p: int
    tk: int
    k_steps: int


def prepare_ffn_params(w1, b1, w2, b2, *, tk=1024, compute_dtype=jnp.bfloat16):
    """One-time pad + cast + hidden-dim tiling of the FFN weights.

    w1: (in_ch, hid); b1: (hid,) or (1, hid); w2: (hid, out); b2: (out,) or (1, out).
    Weights are stored (in, out) so the kernel computes X @ W (== torch's X @ W.T).
    """
    in_ch, hid = w1.shape
    out_ch = w2.shape[1]

    in_p = _round_up(in_ch, 128)
    out_p = _round_up(out_ch, 128)
    # Hidden tiling without over-padding: pick the step count first, then the tile.
    k_steps = max(1, _cdiv(hid, tk))
    tk_eff = _round_up(_cdiv(hid, k_steps), 128)
    hid_p = k_steps * tk_eff

    w1_p = jnp.pad(w1, ((0, in_p - in_ch), (0, hid_p - hid))).astype(compute_dtype)
    w1_p = jnp.transpose(w1_p.reshape(in_p, k_steps, tk_eff), (1, 0, 2))
    b1_p = jnp.pad(jnp.reshape(b1, (1, hid)), ((0, 0), (0, hid_p - hid)))
    b1_p = b1_p.astype(jnp.float32).reshape(k_steps, 1, tk_eff)
    w2_p = jnp.pad(w2, ((0, hid_p - hid), (0, out_p - out_ch))).astype(compute_dtype)
    w2_p = w2_p.reshape(k_steps, tk_eff, out_p)
    b2_p = jnp.pad(jnp.reshape(b2, (1, out_ch)), ((0, 0), (0, out_p - out_ch)))
    b2_p = b2_p.astype(jnp.float32)

    return FFNParams(w1=w1_p, b1=b1_p, w2=w2_p, b2=b2_p,
                     in_ch=in_ch, hid_ch=hid, out_ch=out_ch,
                     in_p=in_p, out_p=out_p, tk=tk_eff, k_steps=k_steps)


def _make_ffn_kernel(resident: bool, use_scratch_acc: bool):
    """Kernel body for one (row-tile i, hidden-tile k) grid step."""
    def kernel(x_ref, w1_ref, b1_ref, w2_ref, b2_ref, o_ref, *scratch):
        acc_ref = scratch[0] if use_scratch_acc else o_ref   # f32 accumulator
        k = pl.program_id(1)

        @pl.when(k == 0)
        def _init():
            acc_ref[...] = jnp.zeros_like(acc_ref)

        if resident:
            # Weights are whole-resident in VMEM: pick the hidden slice here.
            w1 = w1_ref[k]          # (in_p, tk)
            b1 = b1_ref[k]          # (1, tk)  f32
            w2 = w2_ref[k]          # (tk, out_p)
        else:
            w1 = w1_ref[...]
            b1 = b1_ref[...]
            w2 = w2_ref[...]

        # dense1 on this hidden slice (bf16 MXU inputs, f32 accumulation).
        x = x_ref[...].astype(w1.dtype)
        h = jnp.dot(x, w1, preferred_element_type=jnp.float32)
        h = jnp.maximum(h + b1, 0.0)

        # dense2 partial product for this hidden slice.
        acc_ref[...] += jnp.dot(h.astype(w2.dtype), w2,
                                preferred_element_type=jnp.float32)

        @pl.when(k == pl.num_programs(1) - 1)
        def _finalize():
            if use_scratch_acc:
                o_ref[...] = (acc_ref[...] + b2_ref[...]).astype(o_ref.dtype)
            else:
                o_ref[...] = acc_ref[...] + b2_ref[...]

    return kernel


def _vmem_footprint(resident, tm, p: FFNParams, x_itemsize, out_itemsize,
                    use_scratch_acc):
    """Rough per-kernel VMEM residency estimate (buffers double/triple counted)."""
    w_item = jnp.dtype(p.w1.dtype).itemsize
    f = 2 * tm * p.in_p * x_itemsize            # X tile (double-buffered)
    f += 2 * tm * p.out_p * out_itemsize        # output tile (double-buffered)
    if use_scratch_acc:
        f += tm * p.out_p * 4                   # f32 accumulator scratch
    f += tm * p.tk * (4 + w_item)               # hidden intermediate + bf16 copy
    f += 2 * p.out_p * 4                        # b2
    if resident:
        f += 2 * p.k_steps * (p.in_p * p.tk + p.tk * p.out_p) * w_item
        f += 2 * p.k_steps * p.tk * 4           # b1 (full, f32)
    else:
        nbuf = 3 if p.k_steps >= 3 else 2
        f += nbuf * (p.in_p * p.tk + p.tk * p.out_p) * w_item
        f += 2 * p.tk * 4
    return f


def position_wise_ffn(x, params: FFNParams, *, tm=None, weights_resident=None):
    """x: (..., in_ch) -> (..., out_ch) through dense1 -> ReLU -> dense2."""
    p = params
    orig_shape = x.shape
    assert orig_shape[-1] == p.in_ch, "last dim of x must equal in_ch"
    out_dtype = x.dtype

    M = 1
    for d in orig_shape[:-1]:
        M *= d

    vmem_cap = _vmem_capacity_bytes()
    vmem_budget = (vmem_cap * 3) // 4
    headroom = int(vmem_budget * 0.85)

    # Generation-dependent row tile: big enough to amortize weight streaming.
    if tm is None:
        tm = 1024 if vmem_cap >= 96 * 1024 * 1024 else 512
    tm_eff = max(16, min(_round_up(tm, 16), _round_up(M, 16)))
    # Expose >=2 row tiles for megacore sharding when M is large enough.
    if _cdiv(M, tm_eff) == 1 and M >= 512:
        tm_eff = _round_up(_cdiv(M, 2), 16)

    x_isz = jnp.dtype(x.dtype).itemsize
    o_isz = jnp.dtype(out_dtype).itemsize
    use_scratch_acc = (out_dtype != jnp.float32)

    resident = weights_resident
    if resident is None:
        resident = _vmem_footprint(True, tm_eff, p, x_isz, o_isz,
                                   use_scratch_acc) <= headroom
    # Shrink the row tile if the per-step footprint would overflow VMEM.
    while (tm_eff > 64 and
           _vmem_footprint(resident, tm_eff, p, x_isz, o_isz,
                           use_scratch_acc) > headroom):
        tm_eff = max(64, _round_up(tm_eff // 2, 16))

    M_p = _round_up(M, tm_eff)

    # Zero-width pads are elided; the bf16 cast happens on-tile inside the kernel.
    x2d = x.reshape(M, p.in_ch)
    x_p = jnp.pad(x2d, ((0, M_p - M), (0, p.in_p - p.in_ch)))

    grid = (M_p // tm_eff, p.k_steps)

    if resident:
        # Full-extent, constant-index-map weight blocks: DMA'd once, kept resident.
        w1_spec = pl.BlockSpec((p.k_steps, p.in_p, p.tk), lambda i, k: (0, 0, 0))
        b1_spec = pl.BlockSpec((p.k_steps, 1, p.tk), lambda i, k: (0, 0, 0))
        w2_spec = pl.BlockSpec((p.k_steps, p.tk, p.out_p), lambda i, k: (0, 0, 0))
    else:
        if p.k_steps >= 3:
            w1_spec = pl.BlockSpec((None, p.in_p, p.tk), lambda i, k: (k, 0, 0),
                                   pipeline_mode=pl.Buffered(3))
            w2_spec = pl.BlockSpec((None, p.tk, p.out_p), lambda i, k: (k, 0, 0),
                                   pipeline_mode=pl.Buffered(3))
        else:
            w1_spec = pl.BlockSpec((None, p.in_p, p.tk), lambda i, k: (k, 0, 0))
            w2_spec = pl.BlockSpec((None, p.tk, p.out_p), lambda i, k: (k, 0, 0))
        b1_spec = pl.BlockSpec((None, 1, p.tk), lambda i, k: (k, 0, 0))

    in_specs = [
        pl.BlockSpec((tm_eff, p.in_p), lambda i, k: (i, 0)),   # X row tile
        w1_spec,
        b1_spec,
        w2_spec,
        pl.BlockSpec((1, p.out_p), lambda i, k: (0, 0)),       # b2
    ]

    scratch_shapes = ([pltpu.VMEM((tm_eff, p.out_p), jnp.float32)]
                      if use_scratch_acc else [])

    cost = pl.CostEstimate(
        flops=2 * M * (p.in_ch * p.hid_ch + p.hid_ch * p.out_ch),
        transcendentals=0,
        bytes_accessed=(x2d.size * x_isz
                        + p.w1.size * p.w1.dtype.itemsize
                        + p.w2.size * p.w2.dtype.itemsize
                        + p.b1.size * 4 + p.b2.size * 4
                        + M * p.out_ch * o_isz))

    kernel = _make_ffn_kernel(resident, use_scratch_acc)

    y_p = pl.pallas_call(
        kernel,
        out_shape=jax.ShapeDtypeStruct((M_p, p.out_p), out_dtype),
        grid_spec=pltpu.PrefetchScalarGridSpec(
            num_scalar_prefetch=0,
            grid=grid,
            in_specs=in_specs,
            out_specs=pl.BlockSpec((tm_eff, p.out_p), lambda i, k: (i, 0)),
            scratch_shapes=scratch_shapes,
        ),
        compiler_params=pltpu.CompilerParams(
            dimension_semantics=("parallel", "arbitrary"),
            vmem_limit_bytes=int(vmem_budget)),
        cost_estimate=cost,
    )(x_p, p.w1, p.b1, p.w2, p.b2)

    return y_p[:M, :p.out_ch].reshape(*orig_shape[:-1], p.out_ch)


def init_linear(key, fan_in, fan_out, dtype=jnp.float32):
    """Deterministic init matching torch.nn.Linear's U(-1/sqrt(fan_in), 1/sqrt(fan_in))."""
    kw, kb = jax.random.split(key)
    bound = 1.0 / (fan_in ** 0.5)
    # stored as (in, out) so the kernel does X @ W (== torch's X @ W.T)
    w = jax.random.uniform(kw, (fan_in, fan_out), dtype, -bound, bound)
    b = jax.random.uniform(kb, (1, fan_out), dtype, -bound, bound)
    return w, b


def ffn_reference(x, w1, b1, w2, b2, compute_dtype=jnp.bfloat16):
    """Pure-JAX reference with matching numerics (bf16 MXU inputs, f32 accumulation)."""
    shp = x.shape
    x2 = x.reshape(-1, shp[-1]).astype(compute_dtype)
    h = jnp.dot(x2, w1.astype(compute_dtype), preferred_element_type=jnp.float32)
    h = jnp.maximum(h + jnp.reshape(b1, (1, -1)).astype(jnp.float32), 0.0)
    y = jnp.dot(h.astype(compute_dtype), w2.astype(compute_dtype),
                preferred_element_type=jnp.float32)
    y = y + jnp.reshape(b2, (1, -1)).astype(jnp.float32)
    return y.reshape(*shp[:-1], w2.shape[1]).astype(x.dtype)


if __name__ == "__main__":
    key = jax.random.PRNGKey(0)
    k_x, k_a1, k_a2, k_b1, k_b2 = jax.random.split(key, 5)

    batch, seq = 2, 8

    # --- config A: tiny FFN, default tiling (resident weights, single hidden tile)
    in_a, hid_a, out_a = 32, 64, 32
    xa = jax.random.normal(k_x, (batch, seq, in_a), jnp.float32)
    w1a, b1a = init_linear(k_a1, in_a, hid_a)
    w2a, b2a = init_linear(k_a2, hid_a, out_a)
    pa = prepare_ffn_params(w1a, b1a, w2a, b2a)
    ya = jax.block_until_ready(position_wise_ffn(xa, pa))
    ra = ffn_reference(xa, w1a, b1a, w2a, b2a)
    assert ya.shape == ra.shape, "config A shape mismatch"
    assert jnp.allclose(ya, ra, atol=1e-2, rtol=1e-2), "config A mismatch"

    # --- config B: multi-step hidden reduction (k_steps=3), resident-weight path
    in_b, hid_b, out_b = 32, 320, 48
    xb = jax.random.normal(k_x, (batch, seq, in_b), jnp.float32)
    w1b, b1b = init_linear(k_b1, in_b, hid_b)
    w2b, b2b = init_linear(k_b2, hid_b, out_b)
    pb = prepare_ffn_params(w1b, b1b, w2b, b2b, tk=128)
    yb = jax.block_until_ready(position_wise_ffn(xb, pb, weights_resident=True))
    rb = ffn_reference(xb, w1b, b1b, w2b, b2b)
    assert jnp.allclose(yb, rb, atol=1e-2, rtol=1e-2), "config B mismatch"

    # --- config C: same params, forced weight-streaming path (pl.Buffered(3))
    yc = jax.block_until_ready(position_wise_ffn(xb, pb, weights_resident=False))
    assert jnp.allclose(yc, rb, atol=1e-2, rtol=1e-2), "config C mismatch"

    # --- config D: bf16 activations/output -> f32 scratch-accumulator path
    xd = xb.astype(jnp.bfloat16)
    yd = jax.block_until_ready(position_wise_ffn(xd, pb, weights_resident=False))
    rd = ffn_reference(xd, w1b, b1b, w2b, b2b)
    assert yd.dtype == jnp.bfloat16, "config D dtype mismatch"
    assert jnp.allclose(yd.astype(jnp.float32), rd.astype(jnp.float32),
                        atol=3e-2, rtol=3e-2), "config D mismatch"

    print("KERNEL_OK")
</pallas_src>

<mosaic_0001>
module attributes {stable_mosaic.version = 11 : i64} {
  func.func @kernel(%arg0: i32, %arg1: i32, %arg2: memref<16x128xf32, #tpu.memory_space<vmem>>, %arg3: memref<1x128x128xbf16, #tpu.memory_space<vmem>>, %arg4: memref<1x1x128xf32, #tpu.memory_space<vmem>>, %arg5: memref<1x128x128xbf16, #tpu.memory_space<vmem>>, %arg6: memref<1x128xf32, #tpu.memory_space<vmem>>, %arg7: memref<16x128xf32, #tpu.memory_space<vmem>>) attributes {dimension_semantics = [#tpu.dimension_semantics<parallel>, #tpu.dimension_semantics<arbitrary>], iteration_bounds = array<i64: 1, 1>, scalar_prefetch = 0 : i64, scratch_operands = 0 : i64, tpu.core_type = #tpu.core_type<tc>, window_params = [{transform_indices = @transform_0, window_bounds = array<i64: 16, 128>}, {pipeline_mode = #tpu.pipeline_mode<synchronous>, transform_indices = @transform_1, window_bounds = array<i64: 1, 128, 128>}, {pipeline_mode = #tpu.pipeline_mode<synchronous>, transform_indices = @transform_2, window_bounds = array<i64: 1, 1, 128>}, {pipeline_mode = #tpu.pipeline_mode<synchronous>, transform_indices = @transform_3, window_bounds = array<i64: 1, 128, 128>}, {pipeline_mode = #tpu.pipeline_mode<synchronous>, transform_indices = @transform_4, window_bounds = array<i64: 1, 128>}, {transform_indices = @transform_5, window_bounds = array<i64: 16, 128>}]} {
    %c0_i32 = arith.constant 0 : i32
    %0 = arith.cmpi eq, %arg1, %c0_i32 : i32
    %1 = arith.extui %0 : i1 to i32
    %c0_i32_0 = arith.constant 0 : i32
    %2 = arith.cmpi ne, %1, %c0_i32_0 : i32
    scf.if %2 {
      %cst_16 = arith.constant 0.000000e+00 : f32
      %27 = vector.broadcast %cst_16 : f32 to vector<16x128xf32>
      %c0_17 = arith.constant 0 : index
      %c0_18 = arith.constant 0 : index
      %28 = vector.load %arg7[%c0_17, %c0_18] : memref<16x128xf32, #tpu.memory_space<vmem>>, vector<16x128xf32>
      tpu.vector_store %arg7[%c0_17, %c0_18], %27 {strides = array<i32>} : memref<16x128xf32, #tpu.memory_space<vmem>>, vector<16x128xf32>,
    } else {
    }
    %3 = arith.index_cast %arg1 : i32 to index
    %c0 = arith.constant 0 : index
    %c0_1 = arith.constant 0 : index
    %4 = vector.load %arg3[%3, %c0, %c0_1] : memref<1x128x128xbf16, #tpu.memory_space<vmem>>, vector<1x128x128xbf16>
    %5 = vector.shape_cast %4 : vector<1x128x128xbf16> to vector<128x128xbf16>
    %6 = arith.index_cast %arg1 : i32 to index
    %c0_2 = arith.constant 0 : index
    %c0_3 = arith.constant 0 : index
    %7 = vector.load %arg4[%6, %c0_2, %c0_3] : memref<1x1x128xf32, #tpu.memory_space<vmem>>, vector<1x1x128xf32>
    %8 = vector.shape_cast %7 : vector<1x1x128xf32> to vector<1x128xf32>
    %9 = arith.index_cast %arg1 : i32 to index
    %c0_4 = arith.constant 0 : index
    %c0_5 = arith.constant 0 : index
    %10 = vector.load %arg5[%9, %c0_4, %c0_5] : memref<1x128x128xbf16, #tpu.memory_space<vmem>>, vector<1x128x128xbf16>
    %11 = vector.shape_cast %10 : vector<1x128x128xbf16> to vector<128x128xbf16>
    %c0_6 = arith.constant 0 : index
    %c0_7 = arith.constant 0 : index
    %12 = vector.load %arg2[%c0_6, %c0_7] : memref<16x128xf32, #tpu.memory_space<vmem>>, vector<16x128xf32>
    %13 = arith.truncf %12 : vector<16x128xf32> to vector<16x128xbf16>
    %cst = arith.constant dense<0.000000e+00> : vector<16x128xf32>
    %14 = tpu.matmul %13, %5, %cst {dimension_numbers = #tpu.dot_dimension_numbers<[1], [0], [0], [1], [0, 0, 1, 1], [], []>} : vector<16x128xbf16>, vector<128x128xbf16>, vector<16x128xf32> -> vector<16x128xf32>
    %15 = vector.broadcast %8 : vector<1x128xf32> to vector<16x128xf32>
    %16 = arith.addf %14, %15 : vector<16x128xf32>
    %cst_8 = arith.constant 0.000000e+00 : f32
    %17 = vector.broadcast %cst_8 : f32 to vector<16x128xf32>
    %18 = arith.maximumf %16, %17 : vector<16x128xf32>
    %c0_9 = arith.constant 0 : index
    %c0_10 = arith.constant 0 : index
    %19 = vector.load %arg7[%c0_9, %c0_10] : memref<16x128xf32, #tpu.memory_space<vmem>>, vector<16x128xf32>
    %20 = arith.truncf %18 : vector<16x128xf32> to vector<16x128xbf16>
    %cst_11 = arith.constant dense<0.000000e+00> : vector<16x128xf32>
    %21 = tpu.matmul %20, %11, %cst_11 {dimension_numbers = #tpu.dot_dimension_numbers<[1], [0], [0], [1], [0, 0, 1, 1], [], []>} : vector<16x128xbf16>, vector<128x128xbf16>, vector<16x128xf32> -> vector<16x128xf32>
    %22 = arith.addf %19, %21 : vector<16x128xf32>
    %c0_12 = arith.constant 0 : index
    %c0_13 = arith.constant 0 : index
    %23 = vector.load %arg7[%c0_12, %c0_13] : memref<16x128xf32, #tpu.memory_space<vmem>>, vector<16x128xf32>
    tpu.vector_store %arg7[%c0_12, %c0_13], %22 {strides = array<i32>} : memref<16x128xf32, #tpu.memory_space<vmem>>, vector<16x128xf32>,
    %c0_i32_14 = arith.constant 0 : i32
    %24 = arith.cmpi eq, %arg1, %c0_i32_14 : i32
    %25 = arith.extui %24 : i1 to i32
    %c0_i32_15 = arith.constant 0 : i32
    %26 = arith.cmpi ne, %25, %c0_i32_15 : i32
    scf.if %26 {
      %c0_16 = arith.constant 0 : index
      %c0_17 = arith.constant 0 : index
      %27 = vector.load %arg7[%c0_16, %c0_17] : memref<16x128xf32, #tpu.memory_space<vmem>>, vector<16x128xf32>
      %c0_18 = arith.constant 0 : index
      %c0_19 = arith.constant 0 : index
      %28 = vector.load %arg6[%c0_18, %c0_19] : memref<1x128xf32, #tpu.memory_space<vmem>>, vector<1x128xf32>
      %29 = vector.broadcast %28 : vector<1x128xf32> to vector<16x128xf32>
      %30 = arith.addf %27, %29 : vector<16x128xf32>
      %c0_20 = arith.constant 0 : index
      %c0_21 = arith.constant 0 : index
      %31 = vector.load %arg7[%c0_20, %c0_21] : memref<16x128xf32, #tpu.memory_space<vmem>>, vector<16x128xf32>
      tpu.vector_store %arg7[%c0_20, %c0_21], %30 {strides = array<i32>} : memref<16x128xf32, #tpu.memory_space<vmem>>, vector<16x128xf32>,
    } else {
    }
    return
  }
  func.func @transform_0(%arg0: i32, %arg1: i32) -> (i32, i32) {
    %c0_i32 = arith.constant 0 : i32
    %c0_i32_0 = arith.constant 0 : i32
    return %arg0, %c0_i32 : i32, i32
  }
  func.func @transform_1(%arg0: i32, %arg1: i32) -> (i32, i32, i32) {
    %c0_i32 = arith.constant 0 : i32
    %c0_i32_0 = arith.constant 0 : i32
    %c0_i32_1 = arith.constant 0 : i32
    %c0_i32_2 = arith.constant 0 : i32
    return %c0_i32, %c0_i32_0, %c0_i32_1 : i32, i32, i32
  }
  func.func @transform_2(%arg0: i32, %arg1: i32) -> (i32, i32, i32) {
    %c0_i32 = arith.constant 0 : i32
    %c0_i32_0 = arith.constant 0 : i32
    %c0_i32_1 = arith.constant 0 : i32
    %c0_i32_2 = arith.constant 0 : i32
    return %c0_i32, %c0_i32_0, %c0_i32_1 : i32, i32, i32
  }
  func.func @transform_3(%arg0: i32, %arg1: i32) -> (i32, i32, i32) {
    %c0_i32 = arith.constant 0 : i32
    %c0_i32_0 = arith.constant 0 : i32
    %c0_i32_1 = arith.constant 0 : i32
    %c0_i32_2 = arith.constant 0 : i32
    return %c0_i32, %c0_i32_0, %c0_i32_1 : i32, i32, i32
  }
  func.func @transform_4(%arg0: i32, %arg1: i32) -> (i32, i32) {
    %c0_i32 = arith.constant 0 : i32
    %c0_i32_0 = arith.constant 0 : i32
    %c0_i32_1 = arith.constant 0 : i32
    return %c0_i32, %c0_i32_0 : i32, i32
  }
  func.func @transform_5(%arg0: i32, %arg1: i32) -> (i32, i32) {
    %c0_i32 = arith.constant 0 : i32
    %c0_i32_0 = arith.constant 0 : i32
    return %arg0, %c0_i32 : i32, i32
  }
}

</mosaic_0001>

<bundles_post_ra>
// kernel: tpu_custom_call.1
= control target key start
LH: loop header
LB: loop body
LE: loop exit
PB: predicated region body
PF: predicated region fallthrough
CT: control target
= control target key end

     0   :  { %10 = vsyncpa [#allocation3], 0  ;;  %s589_s0 = inlined_call_operand.hbm [shape: f32[16,128], index: 0, kind: input, shape index: {}]   ;;  %s590_s1 = inlined_call_operand.hbm [shape: bf16[1,128,128], index: 1, kind: input, shape index: {}]   ;;  %s591_s2 = inlined_call_operand.vmem [shape: f32[1,1,128], index: 2, kind: input, shape index: {}]   ;;  %s592_s3 = inlined_call_operand.hbm [shape: bf16[1,128,128], index: 3, kind: input, shape index: {}]   ;;  %s593_s4 = inlined_call_operand.vmem [shape: f32[1,128], index: 4, kind: input, shape index: {}]   ;;  %s594_s5 = inlined_call_operand.hbm [shape: f32[16,128], index: 5, kind: output, shape index: {}]  }
   0x1   :  { %11 = vsyncpa [#allocation6], 0 }
   0x2   :  { %12 = vsyncpa [#allocation4], 0  ;;  %s525_s18 = smov [#allocation5]  }
   0x3   :  { %s30_s19 = sshll.u32 %s525_s18, 4  ;;  %s31_s19 = int_to_ptr.vmem [resolvable:$true] %s30_s19 }
   0x4   :  { %s447_s20 = scalar_lea.vmem %s31_s19, 1024  ;;  %p452_p1 = scmp.lt.s32.totalorder %s31_s19, %s31_s19 }
   0x5   :  { %p448_p0 = scmp.ne.s32.totalorder %s31_s19, %s447_s20  ;;  %p453_p2 = scmp.lt.s32.totalorder %s447_s20, %s447_s20 }
   0x7   :  { %p454_p3 = por %p453_p2, %p452_p1 }
   0x9   :  { %p455_p4 = pnand %p454_p3, %p448_p0 }
   0xb   :  { %458 = shalt.err (!%p455_p4)
}
   0xc   :  { %s526_s21 = smov 64   ;;  %s527_s22 = smov 4  }
   0xd   :  { %36 = dma.hbm_to_vmem [thread:$0]  %s590_s1, 1024, %s31_s19, [#allocation6], %s526_s21, %s526_s21, %s527_s22  }
   0xe   :  { %s528_s25 = smov [#allocation2]  }
   0xf   :  { %s18_s26 = sshll.u32 %s528_s25, 4  ;;  %s19_s26 = int_to_ptr.vmem [resolvable:$true] %s18_s26 }
  0x10   :  { %s467_s27 = scalar_lea.vmem %s19_s26, 256  ;;  %p472_p6 = scmp.lt.s32.totalorder %s19_s26, %s19_s26 }
  0x11   :  { %p468_p5 = scmp.ne.s32.totalorder %s19_s26, %s467_s27  ;;  %p473_p7 = scmp.lt.s32.totalorder %s467_s27, %s467_s27 }
  0x13   :  { %p474_p8 = por %p473_p7, %p472_p6 }
  0x15   :  { %p475_p9 = pnand %p474_p8, %p468_p5 }
  0x17   :  { %478 = shalt.err (!%p475_p9)
}
  0x18   :  { %s529_s28 = smov 128   ;;  %s530_s29 = smov 8  }
  0x19   :  { %24 = dma.hbm_to_vmem [thread:$0]  %s589_s0, 256, %s19_s26, [#allocation3], %s529_s28, %s529_s28, %s530_s29  }
  0x1a   :  { %s531_s1 = smov [#allocation7]  }
  0x1b   :  { %s44_s7 = sshll.u32 %s531_s1, 4  ;;  %s45_s7 = int_to_ptr.vmem [resolvable:$true] %s44_s7 }
  0x1c   :  { %s487_s8 = scalar_lea.vmem %s45_s7, 1024  ;;  %p492_p11 = scmp.lt.s32.totalorder %s45_s7, %s45_s7 }
  0x1d   :  { %p488_p10 = scmp.ne.s32.totalorder %s45_s7, %s487_s8  ;;  %p493_p12 = scmp.lt.s32.totalorder %s487_s8, %s487_s8 }
  0x1f   :  { %p494_p13 = por %p493_p12, %p492_p11 }
  0x21   :  { %p495_p0 = pnand %p494_p13, %p488_p10 }
  0x23   :  { %498 = shalt.err (!%p495_p0)
}
  0x24   :  { %50 = dma.hbm_to_vmem [thread:$0]  %s592_s3, 1024, %s45_s7, [#allocation6], %s526_s21, %s526_s21, %s527_s22  }
  0x25   :  { %519 = dma.done.wait [#allocation3], 256  }
  0x26   :  { %520 = vsyncadd [#allocation3], 4294967040 }
  0x27   :  { %521 = dma.done.wait [#allocation6], 2048  }
  0x28   :  { %522 = vsyncadd [#allocation6], 4294965248  ;;  %v532_v0 = vmov 0.0   ;;  %vm533_vm0 = vmmov 0   ;;  %v423_v1 = vld [vmem:[#allocation5 + $0x38] sm:$0xff]   ;;  %v424_v2 = vld [vmem:[#allocation5 + $0x30] sm:$0xff]  }
  0x29   :  { %373 = vmatprep.subr.bf16.mxu0 %v532_v0  ;;  %389 = vmatprep.mubr.msk.bf16.mxu0 %vm533_vm0, %v532_v0  ;;  %v425_v3 = vld [vmem:[#allocation5 + $0x28] sm:$0xff]   ;;  %v431_v4 = vld [vmem:[#allocation7 + $0x38] sm:$0xff]   ;;  %v426_v5 = vld [vmem:[#allocation5 + $0x20] sm:$0xff]   ;;  %s534_s13 = smov [#allocation8]  }
  0x2a   :  { %393 = vmatprep.subr.bf16.mxu1 %v532_v0  ;;  %409 = vmatprep.mubr.msk.bf16.mxu1 %vm533_vm0, %v532_v0  ;;  %v432_v6 = vld [vmem:[#allocation7 + $0x30] sm:$0xff]   ;;  %v427_v7 = vld [vmem:[#allocation5 + $0x18] sm:$0xff]   ;;  %v433_v8 = vld [vmem:[#allocation7 + $0x28] sm:$0xff]  }
  0x2b   :  { %374 = vmatpush3.bf16.msra.mxu0 %v423_v1  ;;  %394 = vmatpush3.bf16.msra.mxu1 %v431_v4  ;;  %v428_v9 = vld [vmem:[#allocation5 + $0x10] sm:$0xff]   ;;  %v434_v10 = vld [vmem:[#allocation7 + $0x20] sm:$0xff]   ;;  %v429_v11 = vld [vmem:[#allocation5 + $0x8] sm:$0xff]  }
  0x2c   :  { %375 = vmatprep.subr.bf16.mxu0 %v532_v0  ;;  %395 = vmatprep.subr.bf16.mxu1 %v532_v0  ;;  %v435_v12 = vld [vmem:[#allocation7 + $0x18] sm:$0xff]   ;;  %v430_v13 = vld [vmem:[#allocation5] sm:$0xff]   ;;  %v107_v14 = vld [vmem:[#allocation2] sm:$0xff] }
  0x2d   :  { %v108_v15 = vld [vmem:[#allocation2 + $0x8] sm:$0xff]  ;;  %v436_v17 = vld [vmem:[#allocation7 + $0x10] sm:$0xff]   ;;  %v437_v18 = vld [vmem:[#allocation7 + $0x8] sm:$0xff]  }
  0x2e   :  { %v109_v16 = vpack.c.bf16 %v108_v15, %v107_v14  ;;  %v438_v19 = vld [vmem:[#allocation7] sm:$0xff]   ;;  %v337_v20 = vld [vmem:[%s591_s2] ss:$0 sm:$0xff]  ;;  %s324_s2 = sshll.u32 %s534_s13, 4  ;;  %s325_s2 = int_to_ptr.vmem [resolvable:$true] %s324_s2 }
  0x2f   :  { %376 = vmatpush3.bf16.msra.mxu0 %v424_v2  ;;  %396 = vmatpush3.bf16.msra.mxu1 %v432_v6  ;;  %v354_v31 = vld [vmem:[%s593_s4] ss:$0 sm:$0xff]  ;;  %s499_s14 = scalar_lea.vmem %s325_s2, 256  ;;  %p504_p2 = scmp.lt.s32.totalorder %s325_s2, %s325_s2 }
  0x30   :  { %377 = vmatprep.subr.bf16.mxu0 %v532_v0  ;;  %397 = vmatprep.subr.bf16.mxu1 %v532_v0  ;;  %p500_p1 = scmp.ne.s32.totalorder %s325_s2, %s499_s14  ;;  %p505_p3 = scmp.lt.s32.totalorder %s499_s14, %s499_s14 }
  0x32   :  { %p506_p4 = por %p505_p3, %p504_p2 }
  0x33   :  { %378 = vmatpush3.bf16.msra.mxu0 %v425_v3  ;;  %398 = vmatpush3.bf16.msra.mxu1 %v433_v8 }
  0x34   :  { %379 = vmatprep.subr.bf16.mxu0 %v532_v0  ;;  %399 = vmatprep.subr.bf16.mxu1 %v532_v0  ;;  %p507_p5 = pnand %p506_p4, %p500_p1 }
  0x37   :  { %380 = vmatpush3.bf16.msra.mxu0 %v426_v5  ;;  %400 = vmatpush3.bf16.msra.mxu1 %v434_v10 }
  0x38   :  { %381 = vmatprep.subr.bf16.mxu0 %v532_v0  ;;  %401 = vmatprep.subr.bf16.mxu1 %v532_v0 }
  0x3b   :  { %382 = vmatpush3.bf16.msra.mxu0 %v427_v7  ;;  %402 = vmatpush3.bf16.msra.mxu1 %v435_v12 }
  0x3c   :  { %383 = vmatprep.subr.bf16.mxu0 %v532_v0  ;;  %403 = vmatprep.subr.bf16.mxu1 %v532_v0 }
  0x3f   :  { %384 = vmatpush3.bf16.msra.mxu0 %v428_v9  ;;  %404 = vmatpush3.bf16.msra.mxu1 %v436_v17 }
  0x40   :  { %385 = vmatprep.subr.bf16.mxu0 %v532_v0  ;;  %405 = vmatprep.subr.bf16.mxu1 %v532_v0 }
  0x43   :  { %386 = vmatpush3.bf16.msra.mxu0 %v429_v11  ;;  %406 = vmatpush3.bf16.msra.mxu1 %v437_v18 }
  0x44   :  { %387 = vmatprep.subr.bf16.mxu0 %v532_v0  ;;  %407 = vmatprep.subr.bf16.mxu1 %v532_v0 }
  0x47   :  { %388 = vmatpush3.bf16.msra.mxu0 %v430_v13  ;;  %408 = vmatpush3.bf16.msra.mxu1 %v438_v19 }
  0x4a   :  { %390 = vmatmul.mubr.bf16.vlgmr.msra.gmra.mxu0 %v109_v16 }
 0x10a   :  { %v198_v21 = vpop.f32.mrf.mxu0 }
 0x10b   :  { %v199_v23 = vadd.f32 %v337_v20, %v198_v21 }
 0x10c   :  { %v391_v22 = vpop.f32.mrf.mxu0 }
 0x10d   :  { %v205_v27 = vmax.f32 %v199_v23, 0.0 }
 0x10e   :  { %v201_v24 = vpop.f32.mrf.mxu0 }
 0x10f   :  { %v202_v25 = vadd.f32 %v337_v20, %v201_v24 }
 0x110   :  { %v392_v26 = vpop.f32.mrf.mxu0 }
 0x111   :  { %v206_v28 = vmax.f32 %v202_v25, 0.0 }
 0x113   :  { %v209_v29 = vpack.c.bf16 %v206_v28, %v205_v27 }
 0x115   :  { %410 = vmatmul.mubr.bf16.vlgmr.msra.gmra.mxu1 %v209_v29 }
 0x1d5   :  { %v292_v30 = vpop.f32.mrf.mxu1 }
 0x1d6   :  { %v315_v33 = vadd.f32 %v354_v31, %v292_v30 }
 0x1d7   :  { %v411_v32 = vpop.f32.mrf.mxu1 }
 0x1d8   :  { %317 = vst [vmem:[#allocation8] sm:$0xff] %v315_v33 }
 0x1d9   :  { %v295_v34 = vpop.f32.mrf.mxu1 }
 0x1da   :  { %v316_v36 = vadd.f32 %v354_v31, %v295_v34 }
 0x1db   :  { %v412_v35 = vpop.f32.mrf.mxu1 }
 0x1dc   :  { %318 = vst [vmem:[#allocation8 + $0x8] sm:$0xff] %v316_v36 }
 0x1dd   :  { %510 = shalt.err (!%p507_p5)
}
 0x1de   :  { %330 = dma.vmem_to_hbm [thread:$0]  %s325_s2, 256, %s594_s5, [#allocation4], %s529_s28, %s529_s28, %s530_s29  }
 0x1df   :  { %523 = dma.done.wait [#allocation4], 256  }
 0x1e0   :  { %524 = vsyncadd [#allocation4], 4294967040 }
 0x1e1   :  { %334 = vsyncpa [#allocation3], 1 }
 0x1e2   :  { %335 = vsyncpa [#allocation6], 1 }
 0x1e3   :  { %336 = vsyncpa [#allocation4], 1 }

</bundles_post_ra>
